<compile_context>
chip_gen: v7x
topology: tpu7x:2x2x1
jax: 0.10.0
libtpu: 0.0.40
codegen_flags: <defaults>
</compile_context>

<pallas_src>
import jax
import jax.numpy as jnp
from jax.experimental import pallas as pl
from jax.experimental.pallas import tpu as pltpu


def _round_up(n, m):
    return ((n + m - 1) // m) * m


def rnn_model_forward(x_btI, w_ih, w_hh, b_ih, b_hh, w_fc, b_fc,
                      *, time_chunk=16, compute_dtype=jnp.float32):
    """x_btI: (B, T, I) float32 — PyTorch batch_first layout.
    Weights in PyTorch shapes: w_ih (H, I), w_hh (H, H), w_fc (O, H)."""
    B, T, I = x_btI.shape
    H = w_hh.shape[0]
    O = w_fc.shape[0]

    # Pad to the vreg grid: sublane (8) for batch, lane (128) for H and O.
    Bp = _round_up(max(B, 8), 8)
    Hp = _round_up(H, 128)
    Op = _round_up(O, 128)

    Tc = max(1, min(time_chunk, T))         # unrolled steps per grid iteration
    n_chunks = pl.cdiv(T, Tc)
    Tp = n_chunks * Tc
    needs_mask = (Tp != T)                  # padded tail timesteps must not update h

    cdt = compute_dtype

    # One pass over x: time-major + zero-pad, flattened to (Tp*Bp, I) so the
    # per-chunk projection is a plain 2-D matmul with an aligned static slice
    # per timestep (time t of the chunk = rows [t*Bp, (t+1)*Bp)).
    x_tm = jnp.transpose(x_btI, (1, 0, 2)).astype(cdt)              # (T, B, I)
    x_pad = jnp.zeros((Tp, Bp, I), cdt).at[:T, :B, :].set(x_tm)
    x_pad = x_pad.reshape(Tp * Bp, I)

    # Weights pre-transposed + zero-padded so every kernel matmul is (M,K)@(K,N).
    w_ih_p = jnp.zeros((I, Hp), cdt).at[:, :H].set(w_ih.T.astype(cdt))
    w_hh_p = jnp.zeros((Hp, Hp), cdt).at[:H, :H].set(w_hh.T.astype(cdt))
    bias_p = jnp.zeros((1, Hp), jnp.float32).at[0, :H].set(
        (b_ih + b_hh).astype(jnp.float32))
    w_fc_p = jnp.zeros((Hp, Op), cdt).at[:H, :O].set(w_fc.T.astype(cdt))
    b_fc_p = jnp.zeros((1, Op), jnp.float32).at[0, :O].set(b_fc.astype(jnp.float32))

    def kernel(x_ref, wih_ref, whh_ref, bias_ref, wfc_ref, bfc_ref,
               out_ref, h_ref):
        c = pl.program_id(0)

        @pl.when(c == 0)
        def _init():
            h_ref[...] = jnp.zeros_like(h_ref)          # h0 = zeros (torch forward)

        # Hoisted input projection + bias for the whole chunk: one MXU matmul,
        # bias broadcast added once per chunk (off the serial path).
        xw = jnp.dot(x_ref[...], wih_ref[...],
                     preferred_element_type=jnp.float32)            # (Tc*Bp, Hp) f32
        xw = xw + bias_ref[...]

        w_hh_v = whh_ref[...]                                       # resident in vregs
        h = h_ref[...]                                              # f32 accumulator

        # Statically unrolled recurrence: only h @ W_hh + tanh on the serial path.
        for t in range(Tc):
            xw_t = xw[t * Bp:(t + 1) * Bp, :]                       # aligned static slice
            pre = xw_t + jnp.dot(h.astype(w_hh_v.dtype), w_hh_v,
                                 preferred_element_type=jnp.float32)
            h_new = jnp.tanh(pre)                                   # f32 tanh (EUP slot)
            if needs_mask:
                # Padded tail timesteps (global t >= T): keep h unchanged.
                h_new = jnp.where(c * Tc + t < T, h_new, h)
            h = h_new

        h_ref[...] = h

        @pl.when(c == pl.num_programs(0) - 1)
        def _finalize():
            out_ref[...] = (jnp.dot(h.astype(wfc_ref.dtype), wfc_ref[...],
                                    preferred_element_type=jnp.float32)
                            + bfc_ref[...]).astype(out_ref.dtype)   # lane-dense (Bp,Op)

    grid_spec = pltpu.PrefetchScalarGridSpec(
        num_scalar_prefetch=0,
        grid=(n_chunks,),
        in_specs=[
            pl.BlockSpec((Tc * Bp, I), lambda c: (c, 0)),   # streamed x chunks
            pl.BlockSpec((I, Hp), lambda c: (0, 0)),        # resident weights
            pl.BlockSpec((Hp, Hp), lambda c: (0, 0)),
            pl.BlockSpec((1, Hp), lambda c: (0, 0)),
            pl.BlockSpec((Hp, Op), lambda c: (0, 0)),
            pl.BlockSpec((1, Op), lambda c: (0, 0)),
        ],
        out_specs=pl.BlockSpec((Bp, Op), lambda c: (0, 0)),
        scratch_shapes=[pltpu.VMEM((Bp, Hp), jnp.float32)],         # carried hidden state
    )

    out_pad = pl.pallas_call(
        kernel,
        out_shape=jax.ShapeDtypeStruct((Bp, Op), jnp.float32),
        grid_spec=grid_spec,
        compiler_params=pltpu.CompilerParams(
            # Time axis is a sequential recurrence — never megacore-shard it.
            dimension_semantics=("arbitrary",),
        ),
    )(x_pad, w_ih_p, w_hh_p, bias_p, w_fc_p, b_fc_p)

    return out_pad[:B, :O]


def reference_forward(x_btI, w_ih, w_hh, b_ih, b_hh, w_fc, b_fc):
    """Pure-JAX reference with identical semantics (for correctness check)."""
    B, T, I = x_btI.shape
    H = w_hh.shape[0]
    h = jnp.zeros((B, H), jnp.float32)
    for t in range(T):
        h = jnp.tanh(x_btI[:, t, :] @ w_ih.T + b_ih + h @ w_hh.T + b_hh)
    return h @ w_fc.T + b_fc


if __name__ == "__main__":
    # Small shapes consistent with the module's forward:
    #   x: (batch, seq, input_size); hidden_size=64 per the spec; small output head.
    B, T, I, H, O = 2, 8, 16, 64, 4

    key = jax.random.PRNGKey(0)
    ks = jax.random.split(key, 7)

    bound = 1.0 / jnp.sqrt(H)
    x    = jax.random.normal(ks[0], (B, T, I), dtype=jnp.float32)
    w_ih = jax.random.uniform(ks[1], (H, I), minval=-bound, maxval=bound)
    w_hh = jax.random.uniform(ks[2], (H, H), minval=-bound, maxval=bound)
    b_ih = jax.random.uniform(ks[3], (H,),   minval=-bound, maxval=bound)
    b_hh = jax.random.uniform(ks[4], (H,),   minval=-bound, maxval=bound)
    w_fc = jax.random.uniform(ks[5], (O, H), minval=-bound, maxval=bound)
    b_fc = jax.random.uniform(ks[6], (O,),   minval=-bound, maxval=bound)

    ref = reference_forward(x, w_ih, w_hh, b_ih, b_hh, w_fc, b_fc)

    # f32, 2 pipelined time chunks of 4 steps.
    out = rnn_model_forward(x, w_ih, w_hh, b_ih, b_hh, w_fc, b_fc, time_chunk=4)
    out = jax.block_until_ready(out)
    assert out.shape == (B, O)
    assert jnp.allclose(out, ref, atol=1e-5, rtol=1e-5), (out, ref)

    # f32, chunk size not dividing T (exercises padded-timestep masking).
    out2 = jax.block_until_ready(
        rnn_model_forward(x, w_ih, w_hh, b_ih, b_hh, w_fc, b_fc, time_chunk=3))
    assert jnp.allclose(out2, ref, atol=1e-5, rtol=1e-5), (out2, ref)

    # f32, whole sequence in one chunk (no pipelining, minimum grid overhead).
    out3 = jax.block_until_ready(
        rnn_model_forward(x, w_ih, w_hh, b_ih, b_hh, w_fc, b_fc, time_chunk=16))
    assert jnp.allclose(out3, ref, atol=1e-5, rtol=1e-5), (out3, ref)

    # bf16 MXU inputs (f32 accumulate + f32 tanh) — the v6e/v7x fast path.
    out4 = jax.block_until_ready(
        rnn_model_forward(x, w_ih, w_hh, b_ih, b_hh, w_fc, b_fc,
                          time_chunk=4, compute_dtype=jnp.bfloat16))
    assert jnp.allclose(out4, ref, atol=3e-2, rtol=3e-2), (out4, ref)

    print("KERNEL_OK")
</pallas_src>

<mosaic_0001>
module attributes {stable_mosaic.version = 11 : i64} {
  func.func @kernel(%arg0: i32, %arg1: memref<32x16xf32, #tpu.memory_space<vmem>>, %arg2: memref<16x128xf32, #tpu.memory_space<vmem>>, %arg3: memref<128x128xf32, #tpu.memory_space<vmem>>, %arg4: memref<1x128xf32, #tpu.memory_space<vmem>>, %arg5: memref<128x128xf32, #tpu.memory_space<vmem>>, %arg6: memref<1x128xf32, #tpu.memory_space<vmem>>, %arg7: memref<8x128xf32, #tpu.memory_space<vmem>>, %arg8: memref<8x128xf32, #tpu.memory_space<vmem>>) attributes {dimension_semantics = [#tpu.dimension_semantics<arbitrary>], iteration_bounds = array<i64: 2>, scalar_prefetch = 0 : i64, scratch_operands = 1 : i64, tpu.core_type = #tpu.core_type<tc>, window_params = [{transform_indices = @transform_0, window_bounds = array<i64: 32, 16>}, {pipeline_mode = #tpu.pipeline_mode<synchronous>, transform_indices = @transform_1, window_bounds = array<i64: 16, 128>}, {pipeline_mode = #tpu.pipeline_mode<synchronous>, transform_indices = @transform_2, window_bounds = array<i64: 128, 128>}, {pipeline_mode = #tpu.pipeline_mode<synchronous>, transform_indices = @transform_3, window_bounds = array<i64: 1, 128>}, {pipeline_mode = #tpu.pipeline_mode<synchronous>, transform_indices = @transform_4, window_bounds = array<i64: 128, 128>}, {pipeline_mode = #tpu.pipeline_mode<synchronous>, transform_indices = @transform_5, window_bounds = array<i64: 1, 128>}, {pipeline_mode = #tpu.pipeline_mode<synchronous>, transform_indices = @transform_6, window_bounds = array<i64: 8, 128>}]} {
    %c0_i32 = arith.constant 0 : i32
    %0 = arith.cmpi eq, %arg0, %c0_i32 : i32
    %1 = arith.extui %0 : i1 to i32
    %c0_i32_0 = arith.constant 0 : i32
    %2 = arith.cmpi ne, %1, %c0_i32_0 : i32
    scf.if %2 {
      %cst_17 = arith.constant 0.000000e+00 : f32
      %31 = vector.broadcast %cst_17 : f32 to vector<8x128xf32>
      %c0_18 = arith.constant 0 : index
      %c0_19 = arith.constant 0 : index
      %32 = vector.load %arg8[%c0_18, %c0_19] : memref<8x128xf32, #tpu.memory_space<vmem>>, vector<8x128xf32>
      tpu.vector_store %arg8[%c0_18, %c0_19], %31 {strides = array<i32>} : memref<8x128xf32, #tpu.memory_space<vmem>>, vector<8x128xf32>,
    } else {
    }
    %c0 = arith.constant 0 : index
    %c0_1 = arith.constant 0 : index
    %3 = vector.load %arg1[%c0, %c0_1] : memref<32x16xf32, #tpu.memory_space<vmem>>, vector<32x16xf32>
    %c0_2 = arith.constant 0 : index
    %c0_3 = arith.constant 0 : index
    %4 = vector.load %arg2[%c0_2, %c0_3] : memref<16x128xf32, #tpu.memory_space<vmem>>, vector<16x128xf32>
    %cst = arith.constant dense<0.000000e+00> : vector<32x128xf32>
    %5 = tpu.matmul %3, %4, %cst {dimension_numbers = #tpu.dot_dimension_numbers<[1], [0], [0], [1], [0, 0, 1, 1], [], []>} : vector<32x16xf32>, vector<16x128xf32>, vector<32x128xf32> -> vector<32x128xf32>
    %c0_4 = arith.constant 0 : index
    %c0_5 = arith.constant 0 : index
    %6 = vector.load %arg4[%c0_4, %c0_5] : memref<1x128xf32, #tpu.memory_space<vmem>>, vector<1x128xf32>
    %7 = vector.broadcast %6 : vector<1x128xf32> to vector<32x128xf32>
    %8 = arith.addf %5, %7 : vector<32x128xf32>
    %c0_6 = arith.constant 0 : index
    %c0_7 = arith.constant 0 : index
    %9 = vector.load %arg3[%c0_6, %c0_7] : memref<128x128xf32, #tpu.memory_space<vmem>>, vector<128x128xf32>
    %c0_8 = arith.constant 0 : index
    %c0_9 = arith.constant 0 : index
    %10 = vector.load %arg8[%c0_8, %c0_9] : memref<8x128xf32, #tpu.memory_space<vmem>>, vector<8x128xf32>
    %11 = vector.extract_strided_slice %8 {offsets = [0, 0], sizes = [8, 128], strides = [1, 1]} : vector<32x128xf32> to vector<8x128xf32>
    %cst_10 = arith.constant dense<0.000000e+00> : vector<8x128xf32>
    %12 = tpu.matmul %10, %9, %cst_10 {dimension_numbers = #tpu.dot_dimension_numbers<[1], [0], [0], [1], [0, 0, 1, 1], [], []>} : vector<8x128xf32>, vector<128x128xf32>, vector<8x128xf32> -> vector<8x128xf32>
    %13 = arith.addf %11, %12 : vector<8x128xf32>
    %14 = math.tanh %13 : vector<8x128xf32>
    %15 = vector.extract_strided_slice %8 {offsets = [8, 0], sizes = [8, 128], strides = [1, 1]} : vector<32x128xf32> to vector<8x128xf32>
    %cst_11 = arith.constant dense<0.000000e+00> : vector<8x128xf32>
    %16 = tpu.matmul %14, %9, %cst_11 {dimension_numbers = #tpu.dot_dimension_numbers<[1], [0], [0], [1], [0, 0, 1, 1], [], []>} : vector<8x128xf32>, vector<128x128xf32>, vector<8x128xf32> -> vector<8x128xf32>
    %17 = arith.addf %15, %16 : vector<8x128xf32>
    %18 = math.tanh %17 : vector<8x128xf32>
    %19 = vector.extract_strided_slice %8 {offsets = [16, 0], sizes = [8, 128], strides = [1, 1]} : vector<32x128xf32> to vector<8x128xf32>
    %cst_12 = arith.constant dense<0.000000e+00> : vector<8x128xf32>
    %20 = tpu.matmul %18, %9, %cst_12 {dimension_numbers = #tpu.dot_dimension_numbers<[1], [0], [0], [1], [0, 0, 1, 1], [], []>} : vector<8x128xf32>, vector<128x128xf32>, vector<8x128xf32> -> vector<8x128xf32>
    %21 = arith.addf %19, %20 : vector<8x128xf32>
    %22 = math.tanh %21 : vector<8x128xf32>
    %23 = vector.extract_strided_slice %8 {offsets = [24, 0], sizes = [8, 128], strides = [1, 1]} : vector<32x128xf32> to vector<8x128xf32>
    %cst_13 = arith.constant dense<0.000000e+00> : vector<8x128xf32>
    %24 = tpu.matmul %22, %9, %cst_13 {dimension_numbers = #tpu.dot_dimension_numbers<[1], [0], [0], [1], [0, 0, 1, 1], [], []>} : vector<8x128xf32>, vector<128x128xf32>, vector<8x128xf32> -> vector<8x128xf32>
    %25 = arith.addf %23, %24 : vector<8x128xf32>
    %26 = math.tanh %25 : vector<8x128xf32>
    %c0_14 = arith.constant 0 : index
    %c0_15 = arith.constant 0 : index
    %27 = vector.load %arg8[%c0_14, %c0_15] : memref<8x128xf32, #tpu.memory_space<vmem>>, vector<8x128xf32>
    tpu.vector_store %arg8[%c0_14, %c0_15], %26 {strides = array<i32>} : memref<8x128xf32, #tpu.memory_space<vmem>>, vector<8x128xf32>,
    %c1_i32 = arith.constant 1 : i32
    %28 = arith.cmpi eq, %arg0, %c1_i32 : i32
    %29 = arith.extui %28 : i1 to i32
    %c0_i32_16 = arith.constant 0 : i32
    %30 = arith.cmpi ne, %29, %c0_i32_16 : i32
    scf.if %30 {
      %c0_17 = arith.constant 0 : index
      %c0_18 = arith.constant 0 : index
      %31 = vector.load %arg5[%c0_17, %c0_18] : memref<128x128xf32, #tpu.memory_space<vmem>>, vector<128x128xf32>
      %cst_19 = arith.constant dense<0.000000e+00> : vector<8x128xf32>
      %32 = tpu.matmul %26, %31, %cst_19 {dimension_numbers = #tpu.dot_dimension_numbers<[1], [0], [0], [1], [0, 0, 1, 1], [], []>} : vector<8x128xf32>, vector<128x128xf32>, vector<8x128xf32> -> vector<8x128xf32>
      %c0_20 = arith.constant 0 : index
      %c0_21 = arith.constant 0 : index
      %33 = vector.load %arg6[%c0_20, %c0_21] : memref<1x128xf32, #tpu.memory_space<vmem>>, vector<1x128xf32>
      %34 = vector.broadcast %33 : vector<1x128xf32> to vector<8x128xf32>
      %35 = arith.addf %32, %34 : vector<8x128xf32>
      %c0_22 = arith.constant 0 : index
      %c0_23 = arith.constant 0 : index
      %36 = vector.load %arg7[%c0_22, %c0_23] : memref<8x128xf32, #tpu.memory_space<vmem>>, vector<8x128xf32>
      tpu.vector_store %arg7[%c0_22, %c0_23], %35 {strides = array<i32>} : memref<8x128xf32, #tpu.memory_space<vmem>>, vector<8x128xf32>,
    } else {
    }
    return
  }
  func.func @transform_0(%arg0: i32) -> (i32, i32) {
    %c0_i32 = arith.constant 0 : i32
    %c0_i32_0 = arith.constant 0 : i32
    return %arg0, %c0_i32 : i32, i32
  }
  func.func @transform_1(%arg0: i32) -> (i32, i32) {
    %c0_i32 = arith.constant 0 : i32
    %c0_i32_0 = arith.constant 0 : i32
    %c0_i32_1 = arith.constant 0 : i32
    return %c0_i32, %c0_i32_0 : i32, i32
  }
  func.func @transform_2(%arg0: i32) -> (i32, i32) {
    %c0_i32 = arith.constant 0 : i32
    %c0_i32_0 = arith.constant 0 : i32
    %c0_i32_1 = arith.constant 0 : i32
    return %c0_i32, %c0_i32_0 : i32, i32
  }
  func.func @transform_3(%arg0: i32) -> (i32, i32) {
    %c0_i32 = arith.constant 0 : i32
    %c0_i32_0 = arith.constant 0 : i32
    %c0_i32_1 = arith.constant 0 : i32
    return %c0_i32, %c0_i32_0 : i32, i32
  }
  func.func @transform_4(%arg0: i32) -> (i32, i32) {
    %c0_i32 = arith.constant 0 : i32
    %c0_i32_0 = arith.constant 0 : i32
    %c0_i32_1 = arith.constant 0 : i32
    return %c0_i32, %c0_i32_0 : i32, i32
  }
  func.func @transform_5(%arg0: i32) -> (i32, i32) {
    %c0_i32 = arith.constant 0 : i32
    %c0_i32_0 = arith.constant 0 : i32
    %c0_i32_1 = arith.constant 0 : i32
    return %c0_i32, %c0_i32_0 : i32, i32
  }
  func.func @transform_6(%arg0: i32) -> (i32, i32) {
    %c0_i32 = arith.constant 0 : i32
    %c0_i32_0 = arith.constant 0 : i32
    %c0_i32_1 = arith.constant 0 : i32
    return %c0_i32, %c0_i32_0 : i32, i32
  }
}

</mosaic_0001>

<bundles_post_ra>
// kernel: tpu_custom_call.1
= control target key start
LH: loop header
LB: loop body
LE: loop exit
PB: predicated region body
PF: predicated region fallthrough
CT: control target
= control target key end

     0   :  { %11 = vsyncpa [#allocation4], 0  ;;  %s1702_s0 = inlined_call_operand.vmem [shape: f32[64,16], index: 0, kind: input, shape index: {}]   ;;  %s1703_s1 = inlined_call_operand.vmem [shape: f32[16,128], index: 1, kind: input, shape index: {}]   ;;  %s1704_s2 = inlined_call_operand.hbm [shape: f32[128,128], index: 2, kind: input, shape index: {}]   ;;  %s1705_s3 = inlined_call_operand.vmem [shape: f32[1,128], index: 3, kind: input, shape index: {}]   ;;  %s1706_s4 = inlined_call_operand.hbm [shape: f32[128,128], index: 4, kind: input, shape index: {}]   ;;  %s1707_s5 = inlined_call_operand.vmem [shape: f32[1,128], index: 5, kind: input, shape index: {}]   ;;  %s1708_s6 = inlined_call_operand.hbm [shape: f32[8,128], index: 6, kind: output, shape index: {}]  }
   0x1   :  { %12 = vsyncpa [#allocation7], 0 }
   0x2   :  { %13 = vsyncpa [#allocation5], 0  ;;  %s1482_s21 = smov 0  }
   0x3 LB: > { %s1488_s22 = sadd.s32 4294967295, %s1433_s21   ;;  %p859_p0 = scmp.ge.s32.totalorder %s1433_s21, 1  ;;  %s1433_s21 = sphi %s1482_s21, %s19_s21  }
   0x4   : > { %p176_p1 = scmp.lt.s32.totalorder %s1433_s21, 3  ;;  %s1435_s23 = smov [#allocation3]  }
   0x5   : > { %s191_s24 = sshll.u32 %s1435_s23, 4  ;;  %p1709_p4 = scmp.eq.s32.totalorder %s1488_s22, 0  ;;  %s192_s24 = int_to_ptr.vmem [resolvable:$true] %s191_s24 }
   0x6   : > { %p1493_p3 = pnand %p859_p0, %p176_p1  ;;  %s1436_s26 = smov [#allocation6]  }
   0x7   : > { %s207_s27 = sshll.u32 %s1436_s26, 4  ;;  %s1333_s7 = scalar_lea.hbm %s1704_s2, 2048  ;;  %s1506_s27 = int_to_ptr.vmem [resolvable:$true] %s207_s27 }
   0x8   : > { %s1711_s25 = scalar_select %p1493_p3, 1, 0 }
   0x9   : > { %p1292_p5 = pneg %p1493_p3  ;;  %p1334_p7 = scmp.ne.s32.totalorder %s1704_s2, %s1333_s7 }
   0xa   : > { %p1340_p11 = scmp.lt.u32.totalorder %s1333_s7, %s1704_s2 }
   0xb   : > { %p1502_p6 = pnand %p1709_p4, %p1292_p5 }
   0xd   : > { %p1335_p8 = pneg %p1502_p6 }
   0xf   : > { %p1336_p9 = pnand %p1335_p8, %p1334_p7 }
  0x11   : > { %p1337_p10 = pneg %p1336_p9 }
  0x13   : > { %p1342_p12 = pnand %p1340_p11, %p1337_p10 }
  0x15   : > { %1345 = shalt.err (!%p1342_p12)
}
  0x16   : > { %s1346_s12 = scalar_lea.vmem %s192_s24, 2048  ;;  %p1354_p5 = scmp.lt.s32.totalorder %s192_s24, %s192_s24 }
  0x17   : > { %p1347_p13 = scmp.ne.s32.totalorder %s192_s24, %s1346_s12  ;;  %p1355_p2 = scmp.lt.s32.totalorder %s1346_s12, %s1346_s12 }
  0x19   : > { %p1349_p0 = pnand %p1347_p13, %p1335_p8  ;;  %p1356_p4 = por %p1355_p2, %p1354_p5 }
  0x1b   : > { %p1350_p1 = pneg %p1349_p0 }
  0x1d   : > { %p1357_p3 = pnand %p1356_p4, %p1350_p1 }
  0x1f   : > { %1360 = shalt.err (!%p1357_p3)
}
  0x20   : > { %s1437_s13 = smov 128   ;;  %s1438_s14 = smov 8  }
  0x21   : > { %1295 = dma.hbm_to_vmem [thread:$0]  (!%p1502_p6), %s1704_s2, 2048, %s192_s24, [#allocation4], %s1437_s13, %s1437_s13, %s1438_s14  }
  0x22   : > { %s1361_s19 = scalar_lea.hbm %s1706_s4, 2048 }
  0x23   : > { %p1362_p7 = scmp.ne.s32.totalorder %s1706_s4, %s1361_s19  ;;  %p1368_p4 = scmp.lt.u32.totalorder %s1361_s19, %s1706_s4 }
  0x25   : > { %p1364_p2 = pnand %p1362_p7, %p1335_p8 }
  0x27   : > { %p1365_p3 = pneg %p1364_p2 }
  0x29   : > { %p1370_p9 = pnand %p1368_p4, %p1365_p3 }
  0x2b   : > { %1373 = shalt.err (!%p1370_p9)
}
  0x2c   : > { %s1374_s24 = scalar_lea.vmem %s1506_s27, 2048  ;;  %p1382_p13 = scmp.lt.s32.totalorder %s1506_s27, %s1506_s27 }
  0x2d   : > { %p1375_p10 = scmp.ne.s32.totalorder %s1506_s27, %s1374_s24  ;;  %p1383_p0 = scmp.lt.s32.totalorder %s1374_s24, %s1374_s24 }
  0x2f   : > { %p1377_p11 = pnand %p1375_p10, %p1335_p8  ;;  %p1384_p1 = por %p1383_p0, %p1382_p13 }
  0x31   : > { %p1378_p12 = pneg %p1377_p11 }
  0x33   : > { %p1385_p5 = pnand %p1384_p1, %p1378_p12 }
  0x35   : > { %1388 = shalt.err (!%p1385_p5)
}
  0x36   : > { %1298 = dma.hbm_to_vmem [thread:$0]  (!%p1502_p6), %s1706_s4, 2048, %s1506_s27, [#allocation7], %s1437_s13, %s1437_s13, %s1438_s14  }
  0x37   : > { %p1713_p7 = scmp.ne.s32.totalorder %s1711_s25, 0 }
  0x38   : > { %p1714_p2 = scmp.eq.s32.totalorder (!%p1713_p7), %s1488_s22, 0 }
  0x39   : > { %235 = sbr.rel (%p1713_p7) target bundleno = 1251 (0x4e3), region = 44 }
  0x40   : > { %1420 = dma.done.wait (%p1714_p2), [#allocation4], 2048   ;;  %p1715_p8 = pmov %p1714_p2 }
  0x41   : > { %p1716_p3 = pmov %p1714_p2 }
  0x42   : > { %1422 = vsyncadd (%p1715_p8), [#allocation4], 4294965248 }
  0x43   : > { %1424 = dma.done.wait (%p1716_p3), [#allocation7], 2048   ;;  %p1717_p4 = pmov %p1714_p2 }
  0x44   : > { %s866_s28 = sshll.u32 %s1488_s22, 2  ;;  %p1718_p6 = scmp.ne.s32.totalorder %s1488_s22, 0 }
  0x45   : > { %1426 = vsyncadd (%p1717_p4), [#allocation7], 4294965248  ;;  %p265_p9 = scmp.lt.s32.totalorder %s866_s28, 7  ;;  %v1439_v0 = vmov (!%p1718_p6), 0.0  }
  0x46   : > { %273 = sbr.rel (%p1718_p6) target bundleno = 77 (0x4d), region = 56  ;;  %274 = vst [vmem:[#allocation2] sm:$0xff] (!%p1718_p6), %v1439_v0 }
  0x47   : > { %s1720_s28 = smov (!%p265_p9, %s866_s28), 7 }
  0x48   : > { %s867_s27 = sshll.u32 %s1720_s28, 3 }
  0x49   : > { %s1569_s9 = scalar_lea.vmem %s1702_s0, %s867_s27 }
  0x4d PF: > { %v386_v1 = vld [vmem:[#allocation3] sm:$0xff]  ;;  %v387_v2 = vld [vmem:[#allocation3 + $0x8] sm:$0xff]  ;;  %v388_v3 = vld [vmem:[#allocation3 + $0x10] sm:$0xff]  ;;  %v1440_v4 = vmov 0.0|0.0   ;;  %vm1441_vm0 = vmmov 0   ;;  %v1442_v7 = vmov 0.0  }
  0x4e   : > { %1160 = vmatprep.subr.bf16.mxu1 %v1440_v4  ;;  %v1574_v5 = vpack.c.bf16 %v387_v2, %v386_v1  ;;  %v389_v6 = vld [vmem:[#allocation3 + $0x18] sm:$0xff]  ;;  %1013 = vmatprep.mubr.msk.f32.mxu1 %vm1441_vm0, %v1442_v7  ;;  %v390_v9 = vld [vmem:[#allocation3 + $0x20] sm:$0xff]  ;;  %vm288_vm1 = vcmask 130048   ;;  %v391_v10 = vld [vmem:[#allocation3 + $0x28] sm:$0xff]  ;;  %p874_p10 = scmp.ne.s32.totalorder %s1488_s22, 1 }
  0x4f   : > { %v1579_v8 = vpack.c.bf16 %v389_v6, %v388_v3  ;;  %v279_v11 = vld [vmem:[%s1703_s1] sm:$0xff]  ;;  %v280_v12 = vld [vmem:[%s1703_s1 + $0x8] sm:$0xff]  ;;  %v1591_v15 = vpack.c.bf16 %v391_v10, %v390_v9  ;;  %v392_v16 = vld [vmem:[#allocation3 + $0x30] sm:$0xff]  ;;  %v1443_v63 = vmov (!%p874_p10), 0.0|0.0   ;;  %vm1444_vm2 = vmmov (!%p874_p10), 0  }
  0x50   : > { %1162 = vmatpush3.bf16.msra.mxu1 %v1574_v5  ;;  %v1156_v13 = vpack.c.bf16 %v280_v12, %v279_v11  ;;  %v275_v14 = vld [vmem:[%s1569_s9] sm:$0xff]  ;;  %v276_v18 = vld [vmem:[%s1569_s9 + $0x8] sm:$0xff]  ;;  %v395_v21 = vld [vmem:[#allocation3 + $0x48] sm:$0xff]  ;;  %v1445_v2 = vmov (!%p874_p10), 0.0  }
  0x51   : > { %1163 = vmatprep.subr.bf16.mxu1 %v1440_v4  ;;  %975 = vmatprep.mubr.msk.f32.mxu0 %vm288_vm1, %v275_v14  ;;  %v393_v17 = vld [vmem:[#allocation3 + $0x38] sm:$0xff]  ;;  %v394_v20 = vld [vmem:[#allocation3 + $0x40] sm:$0xff]  ;;  %v396_v23 = vld [vmem:[#allocation3 + $0x50] sm:$0xff] }
  0x52   : > { %1157 = vmatprep.subr.bf16.mxu0 %v1156_v13  ;;  %v1597_v19 = vpack.c.bf16 %v393_v17, %v392_v16  ;;  %v1604_v22 = vpack.c.bf16 %v395_v21, %v394_v20  ;;  %v397_v24 = vld [vmem:[#allocation3 + $0x58] sm:$0xff]  ;;  %v398_v26 = vld [vmem:[#allocation3 + $0x60] sm:$0xff]  ;;  %v399_v27 = vld [vmem:[#allocation3 + $0x68] sm:$0xff] }
  0x53   : > { %1159 = vmatpush3.bf16.msra.mxu0 %v1156_v13  ;;  %v1610_v25 = vpack.c.bf16 %v397_v24, %v396_v23  ;;  %v1616_v28 = vpack.c.bf16 %v399_v27, %v398_v26  ;;  %v400_v29 = vld [vmem:[#allocation3 + $0x70] sm:$0xff]  ;;  %v401_v30 = vld [vmem:[#allocation3 + $0x78] sm:$0xff]  ;;  %v277_v33 = vld [vmem:[%s1569_s9 + $0x10] sm:$0xff] }
  0x54   : > { %1165 = vmatpush3.bf16.msra.mxu1 %v1579_v8  ;;  %1184 = vmatprep.subr.bf16.mxu0 %v1440_v4  ;;  %v1182_v31 = vpack.c.bf16 %v401_v30, %v400_v29  ;;  %v402_v32 = vld [vmem:[#allocation2] sm:$0xff]  ;;  %v278_v34 = vld [vmem:[%s1569_s9 + $0x18] sm:$0xff]  ;;  %v696_v60 = vld [vmem:[#allocation6] sm:$0xff] (!%p874_p10) }
  0x55   : > { %1166 = vmatprep.subr.bf16.mxu1 %v1440_v4  ;;  %v869_v37 = vld [vmem:[%s1705_s3] ss:$0 sm:$0xff]  ;;  %v697_v61 = vld [vmem:[#allocation6 + $0x8] sm:$0xff] (!%p874_p10)  ;;  %v698_v62 = vld [vmem:[#allocation6 + $0x10] sm:$0xff] (!%p874_p10) }
  0x56   : > { %976 = vmatmul.mubr.msk.f32.vlgmr.msra.gmra.mrb[0].mxu0 %vm288_vm1, %v276_v18  ;;  %v1257_v0 = vpack.c.bf16 (!%p874_p10), %v697_v61, %v696_v60  ;;  %v699_v1 = vld [vmem:[#allocation6 + $0x18] sm:$0xff] (!%p874_p10)  ;;  %v704_v10 = vld [vmem:[#allocation6 + $0x40] sm:$0xff] (!%p874_p10)  ;;  %v705_v11 = vld [vmem:[#allocation6 + $0x48] sm:$0xff] (!%p874_p10) }
  0x57   : > { %1186 = vmatpush3.bf16.msra.mxu0 %v1574_v5  ;;  %978 = vmatprep.mubr.msk.f32.mxu0 %vm288_vm1, %v277_v33  ;;  %v1260_v3 = vpack.c.bf16 (!%p874_p10), %v699_v1, %v698_v62  ;;  %v1269_v12 = vpack.c.bf16 (!%p874_p10), %v705_v11, %v704_v10  ;;  %v706_v13 = vld [vmem:[#allocation6 + $0x50] sm:$0xff] (!%p874_p10)  ;;  %v707_v14 = vld [vmem:[#allocation6 + $0x58] sm:$0xff] (!%p874_p10)  ;;  %v708_v16 = vld [vmem:[#allocation6 + $0x60] sm:$0xff] (!%p874_p10) }
  0x58   : > { %1168 = vmatpush3.bf16.msra.mxu1 %v1591_v15  ;;  %1187 = vmatprep.subr.bf16.mxu0 %v1440_v4  ;;  %v709_v17 = vld [vmem:[#allocation6 + $0x68] sm:$0xff] (!%p874_p10)  ;;  %v711_v20 = vld [vmem:[#allocation6 + $0x78] sm:$0xff] (!%p874_p10) }
  0x59   : > { %1169 = vmatprep.subr.bf16.mxu1 %v1440_v4  ;;  %v1275_v18 = vpack.c.bf16 (!%p874_p10), %v709_v17, %v708_v16 }
  0x5a   : > { %979 = vmatmul.mubr.msk.f32.gmra.mrb[2].mxu0 %vm288_vm1, %v278_v34 }
  0x5b   : > { %1189 = vmatpush3.bf16.msra.mxu0 %v1579_v8  ;;  %1048 = vmatprep.mubr.msk.f32.mxu0 %vm1441_vm0, %v1442_v7 }
  0x5c   : > { %1171 = vmatpush3.bf16.msra.mxu1 %v1597_v19  ;;  %1190 = vmatprep.subr.bf16.mxu0 %v1440_v4 }
  0x5d   : > { %1172 = vmatprep.subr.bf16.mxu1 %v1440_v4 }
  0x5f   : > { %1192 = vmatpush3.bf16.msra.mxu0 %v1591_v15 }
  0x60   : > { %1174 = vmatpush3.bf16.msra.mxu1 %v1604_v22  ;;  %1193 = vmatprep.subr.bf16.mxu0 %v1440_v4 }
  0x61   : > { %1175 = vmatprep.subr.bf16.mxu1 %v1440_v4 }
  0x63   : > { %1195 = vmatpush3.bf16.msra.mxu0 %v1597_v19 }
  0x64   : > { %1177 = vmatpush3.bf16.msra.mxu1 %v1610_v25  ;;  %1196 = vmatprep.subr.bf16.mxu0 %v1440_v4 }
  0x65   : > { %1178 = vmatprep.subr.bf16.mxu1 %v1440_v4 }
  0x67   : > { %1198 = vmatpush3.bf16.msra.mxu0 %v1604_v22 }
  0x68   : > { %1180 = vmatpush3.bf16.msra.mxu1 %v1616_v28  ;;  %1199 = vmatprep.subr.bf16.mxu0 %v1440_v4 }
  0x69   : > { %1181 = vmatprep.subr.bf16.mxu1 %v1440_v4 }
  0x6b   : > { %1201 = vmatpush3.bf16.msra.mxu0 %v1610_v25 }
  0x6c   : > { %1183 = vmatpush3.bf16.msra.mxu1 %v1182_v31  ;;  %1202 = vmatprep.subr.bf16.mxu0 %v1440_v4 }
  0x6d   : > { %1208 = vmatprep.subr.bf16.mxu1 %v1440_v4 }
  0x6f   : > { %1014 = vmatmul.mubr.f32.vlgmr.msra.gmra.mrb[0].mxu1 %v402_v32  ;;  %1204 = vmatpush3.bf16.msra.mxu0 %v1616_v28 }
  0x70   : > { %1210 = vmatpush3.bf16.msra.mxu1 %v1574_v5  ;;  %1083 = vmatprep.mubr.msk.f32.mxu1 %vm1441_vm0, %v1442_v7 }
  0x71   : > { %1211 = vmatprep.subr.bf16.mxu1 %v1440_v4  ;;  %1205 = vmatprep.subr.bf16.mxu0 %v1440_v4 }
  0x73   : > { %1207 = vmatpush3.bf16.msra.mxu0 %v1182_v31 }
  0x74   : > { %1213 = vmatpush3.bf16.msra.mxu1 %v1579_v8  ;;  %1232 = vmatprep.subr.bf16.mxu0 %v1440_v4 }
  0x75   : > { %1214 = vmatprep.subr.bf16.mxu1 %v1440_v4 }
  0x78   : > { %1216 = vmatpush3.bf16.msra.mxu1 %v1591_v15 }
  0x79   : > { %1217 = vmatprep.subr.bf16.mxu1 %v1440_v4 }
  0x7c   : > { %1219 = vmatpush3.bf16.msra.mxu1 %v1597_v19 }
  0x7d   : > { %1220 = vmatprep.subr.bf16.mxu1 %v1440_v4 }
  0x80   : > { %1222 = vmatpush3.bf16.msra.mxu1 %v1604_v22 }
  0x81   : > { %1223 = vmatprep.subr.bf16.mxu1 %v1440_v4 }
  0x84   : > { %1225 = vmatpush3.bf16.msra.mxu1 %v1610_v25 }
  0x85   : > { %1226 = vmatprep.subr.bf16.mxu1 %v1440_v4 }
  0x88   : > { %1228 = vmatpush3.bf16.msra.mxu1 %v1616_v28 }
  0x89   : > { %1229 = vmatprep.subr.bf16.mxu1 %v1440_v4 }
  0x8c   : > { %1231 = vmatpush3.bf16.msra.mxu1 %v1182_v31 }
 0x129   : > { %v977_v35 = vpop.f32.mrb[0].mxu0 }
 0x12a   : > { %v367_v36 = vpop.f32.mrb[1].mxu0  ;;  %v373_v45 = vadd.f32 %v977_v35, %v869_v37 }
 0x12b   : > { %v368_v38 = vadd.f32 %v869_v37, %v367_v36 }
 0x12d   : > { %v980_v43 = vpop.f32.mrb[2].mxu0 }
 0x12e   : > { %v377_v44 = vpop.f32.mrb[3].mxu0  ;;  %v383_v55 = vadd.f32 %v980_v43, %v869_v37 }
 0x12f   : > { %v378_v50 = vadd.f32 %v869_v37, %v377_v44 }
 0x142   : > { %v469_v39 = vpop.f32.mrb[0].mxu1 }
 0x143   : > { %v473_v40 = vadd.f32 %v469_v39, %v368_v38  ;;  %v1015_v41 = vpop.f32.mrb[1].mxu1 }
 0x145   : > { %1325 = vtanh.f32 %v473_v40 }
 0x14f   : > { %v1326_v42 = vpop.eup %1325 }
 0x150   : > { %1049 = vmatmul.mubr.f32.vlgmr.msra.gmra.mrb[4].mxu0 %v1326_v42 }
 0x151   : > { %1234 = vmatpush3.bf16.msra.mxu0 %v1574_v5  ;;  %1118 = vmatprep.mubr.msk.f32.mxu0 %vm1441_vm0, %v1442_v7  ;;  %v701_v5 = vld [vmem:[#allocation6 + $0x28] sm:$0xff] (!%p874_p10)  ;;  %v702_v7 = vld [vmem:[#allocation6 + $0x30] sm:$0xff] (!%p874_p10) }
 0x152   : > { %1235 = vmatprep.subr.bf16.mxu0 %v1440_v4 }
 0x155   : > { %1237 = vmatpush3.bf16.msra.mxu0 %v1579_v8  ;;  %v703_v8 = vld [vmem:[#allocation6 + $0x38] sm:$0xff] (!%p874_p10) }
 0x156   : > { %1238 = vmatprep.subr.bf16.mxu0 %v1440_v4  ;;  %v1266_v9 = vpack.c.bf16 (!%p874_p10), %v703_v8, %v702_v7 }
 0x159   : > { %1240 = vmatpush3.bf16.msra.mxu0 %v1591_v15  ;;  %v1272_v15 = vpack.c.bf16 (!%p874_p10), %v707_v14, %v706_v13 }
 0x15a   : > { %1241 = vmatprep.subr.bf16.mxu0 %v1440_v4 }
 0x15d   : > { %1243 = vmatpush3.bf16.msra.mxu0 %v1597_v19  ;;  %v710_v19 = vld [vmem:[#allocation6 + $0x70] sm:$0xff] (!%p874_p10) }
 0x15e   : > { %1244 = vmatprep.subr.bf16.mxu0 %v1440_v4  ;;  %v1278_v21 = vpack.c.bf16 (!%p874_p10), %v711_v20, %v710_v19 }
 0x161   : > { %1246 = vmatpush3.bf16.msra.mxu0 %v1604_v22  ;;  %v875_v22 = vld [vmem:[%s1707_s5] ss:$0 sm:$0xff] (!%p874_p10) }
 0x162   : > { %1247 = vmatprep.subr.bf16.mxu0 %v1440_v4 }
 0x165   : > { %1249 = vmatpush3.bf16.msra.mxu0 %v1610_v25 }
 0x166   : > { %1250 = vmatprep.subr.bf16.mxu0 %v1440_v4 }
 0x169   : > { %1252 = vmatpush3.bf16.msra.mxu0 %v1616_v28 }
 0x16a   : > { %1253 = vmatprep.subr.bf16.mxu0 %v1440_v4  ;;  %v700_v4 = vld [vmem:[#allocation6 + $0x20] sm:$0xff] (!%p874_p10) }
 0x16b   : > { %v1263_v6 = vpack.c.bf16 (!%p874_p10), %v701_v5, %v700_v4 }
 0x16d   : > { %1255 = vmatpush3.bf16.msra.mxu0 %v1182_v31 }
 0x16e   : > { %1256 = vmatprep.subr.bf16.mxu0 (!%p874_p10), %v1443_v63 }
 0x223   : > { %v541_v46 = vpop.f32.mrb[4].mxu0 }
 0x224   : > { %v545_v47 = vadd.f32 %v541_v46, %v373_v45  ;;  %v1050_v48 = vpop.f32.mrb[5].mxu0 }
 0x226   : > { %1327 = vtanh.f32 %v545_v47 }
 0x230   : > { %v1328_v49 = vpop.eup %1327 }
 0x231   : > { %1084 = vmatmul.mubr.f32.vlgmr.msra.gmra.mrb[2].mxu1 %v1328_v49 }
 0x304   : > { %v613_v51 = vpop.f32.mrb[2].mxu1 }
 0x305   : > { %v617_v52 = vadd.f32 %v613_v51, %v378_v50  ;;  %v1085_v53 = vpop.f32.mrb[3].mxu1 }
 0x307   : > { %1329 = vtanh.f32 %v617_v52 }
 0x311   : > { %v1330_v54 = vpop.eup %1329 }
 0x312   : > { %1119 = vmatmul.mubr.f32.vlgmr.msra.gmra.mrb[6].mxu0 %v1330_v54 }
 0x313   : > { %1153 = vmatprep.mubr.msk.f32.mxu0 (!%p874_p10), %vm1444_vm2, %v1445_v2  ;;  %1258 = vmatpush3.bf16.msra.mxu0 (!%p874_p10), %v1257_v0 }
 0x314   : > { %1259 = vmatprep.subr.bf16.mxu0 (!%p874_p10), %v1443_v63 }
 0x317   : > { %1261 = vmatpush3.bf16.msra.mxu0 (!%p874_p10), %v1260_v3 }
 0x318   : > { %1262 = vmatprep.subr.bf16.mxu0 (!%p874_p10), %v1443_v63 }
 0x31b   : > { %1264 = vmatpush3.bf16.msra.mxu0 (!%p874_p10), %v1263_v6 }
 0x31c   : > { %1265 = vmatprep.subr.bf16.mxu0 (!%p874_p10), %v1443_v63 }
 0x31f   : > { %1267 = vmatpush3.bf16.msra.mxu0 (!%p874_p10), %v1266_v9 }
 0x320   : > { %1268 = vmatprep.subr.bf16.mxu0 (!%p874_p10), %v1443_v63 }
 0x323   : > { %1270 = vmatpush3.bf16.msra.mxu0 (!%p874_p10), %v1269_v12 }
 0x324   : > { %1271 = vmatprep.subr.bf16.mxu0 (!%p874_p10), %v1443_v63 }
 0x327   : > { %1273 = vmatpush3.bf16.msra.mxu0 (!%p874_p10), %v1272_v15 }
 0x328   : > { %1274 = vmatprep.subr.bf16.mxu0 (!%p874_p10), %v1443_v63 }
 0x32b   : > { %1276 = vmatpush3.bf16.msra.mxu0 (!%p874_p10), %v1275_v18 }
 0x32c   : > { %1277 = vmatprep.subr.bf16.mxu0 (!%p874_p10), %v1443_v63 }
 0x32f   : > { %1279 = vmatpush3.bf16.msra.mxu0 (!%p874_p10), %v1278_v21 }
 0x3e5   : > { %v685_v56 = vpop.f32.mrb[6].mxu0 }
 0x3e6   : > { %v689_v57 = vadd.f32 %v685_v56, %v383_v55  ;;  %v1120_v58 = vpop.f32.mrb[7].mxu0 }
 0x3e8   : > { %1331 = vtanh.f32 %v689_v57 }
 0x3ed   : > { %695 = sbr.rel (%p874_p10) target bundleno = 1226 (0x4ca), region = 60 }
 0x3f2   : > { %v1332_v59 = vpop.eup %1331 }
 0x3f3   : > { %691 = vst [vmem:[#allocation2] sm:$0xff] %v1332_v59  ;;  %1154 = vmatmul.mubr.f32.vlgmr.msra.gmra.mrb[0].mxu0 (!%p874_p10), %v1332_v59 }
 0x4c6   : > { %v785_v23 = vpop.f32.mrb[0].mxu0 }
 0x4c7   : > { %v786_v24 = vadd.f32 %v875_v22, %v785_v23  ;;  %v1155_v25 = vpop.f32.mrb[1].mxu0 }
 0x4c9   : > { %789 = vst [vmem:[#allocation8] sm:$0xff] %v786_v24 }
 0x4ca PF: > { %p1303_p11 = scmp.eq.s32.totalorder %s1488_s22, 1  ;;  %s1446_s18 = smov [#allocation8]  }
 0x4cb   : > { %s797_s19 = sshll.u32 %s1446_s18, 4  ;;  %s798_s19 = int_to_ptr.vmem [resolvable:$true] %s797_s19 }
 0x4cc   : > { %s1389_s20 = scalar_lea.vmem %s798_s19, 128  ;;  %p1396_p1 = scmp.lt.s32.totalorder %s798_s19, %s798_s19 }
 0x4cd   : > { %p1390_p12 = scmp.ne.s32.totalorder %s798_s19, %s1389_s20  ;;  %p1397_p5 = scmp.lt.s32.totalorder %s1389_s20, %s1389_s20 }
 0x4cf   : > { %p1391_p13 = pnand %p1390_p12, %p1303_p11  ;;  %p1398_p7 = por %p1397_p5, %p1396_p1 }
 0x4d1   : > { %p1392_p0 = pneg %p1391_p13 }
 0x4d3   : > { %p1399_p2 = pnand %p1398_p7, %p1392_p0 }
 0x4d5   : > { %1402 = shalt.err (!%p1399_p2)
}
 0x4d6   : > { %s1403_s29 = scalar_lea.hbm %s1708_s6, 128 }
 0x4d7   : > { %p1404_p8 = scmp.ne.s32.totalorder %s1708_s6, %s1403_s29  ;;  %p1409_p9 = scmp.lt.u32.totalorder %s1403_s29, %s1708_s6 }
 0x4d9   : > { %p1405_p3 = pnand %p1404_p8, %p1303_p11 }
 0x4db   : > { %p1406_p4 = pneg %p1405_p3 }
 0x4dd   : > { %p1411_p6 = pnand %p1409_p9, %p1406_p4 }
 0x4df   : > { %1414 = shalt.err (!%p1411_p6)
}
 0x4e0   : > { %1289 = dma.vmem_to_hbm [thread:$0]  (%p1303_p11), %s798_s19, 128, %s1708_s6, [#allocation5]  }
 0x4e1   : > { %1428 = dma.done.wait (%p1303_p11), [#allocation5], 128  }
 0x4e2   : > { %1430 = vsyncadd (%p1303_p11), [#allocation5], 4294967168 }
 0x4e3 PF: > { %s19_s21 = sadd.s32 1, %s1433_s21  }
 0x4e4   : > { %p16_p10 = scmp.ge.s32.totalorder %s19_s21, 4  }
 0x4e6   :  { %18 = sbr.rel (!%p16_p10) target bundleno = 3 (0x3), region = 88 }
 0x4ed   :  { %810 = vsyncpa [#allocation4], 1 }
 0x4ee   :  { %812 = vsyncpa [#allocation4 + $0x1], 1 }
 0x4ef   :  { %813 = vsyncpa [#allocation7], 1 }
 0x4f0   :  { %814 = vsyncpa [#allocation5], 1 }
 0x4f1   :  { %816 = vsyncpa [#allocation5 + $0x1], 1 }

</bundles_post_ra>
